<compile_context>
chip_gen: v5e
topology: v5e:2x2
jax: 0.10.0
libtpu: 0.0.40
codegen_flags: <defaults>
</compile_context>

<pallas_src>
import functools

import jax
import jax.numpy as jnp
from jax import lax
from jax.experimental import pallas as pl
from jax.experimental.pallas import tpu as pltpu

_LANES = 128
_MAX_UNROLL_BINS = 64


def _cdiv(a, b):
    return (a + b - 1) // b


def _id_avg_kernel(ids_ref, core_ref, aux_ref, out_ref, counts_ref, *,
                   inv_numel, rows, ragged):
    """Grid axis 0 walks sublane-dense id blocks (reduction axis).

    ids_ref    : [block_rows, 128] integer ids, padded with -1 sentinel
    core_ref   : [Nc, F] float
    aux_ref    : [Na, F] float
    out_ref    : [1,  F] float32
    counts_ref : VMEM scratch [Nc+Na, 8, 128] int32 (per-(sublane,lane) hist)
    """
    num_core = core_ref.shape[0]
    num_aux = aux_ref.shape[0]
    num_bins = num_core + num_aux
    block_rows = ids_ref.shape[0]

    @pl.when(pl.program_id(0) == 0)
    def _init():
        counts_ref[...] = jnp.zeros_like(counts_ref)

    # Widen narrow id dtypes in-register (no-op for int32 inputs).
    ids = ids_ref[...].astype(jnp.int32)  # [block_rows, 128]

    if ragged:
        # The last (partial) grid block reaches past the array extent; those
        # rows contain undefined VMEM data and MUST be masked out.
        row = lax.broadcasted_iota(jnp.int32, ids.shape, 0)
        row = row + pl.program_id(0) * block_rows
        ids = jnp.where(row < rows, ids, -1)

    def accumulate(n):
        onehot = (ids == n).astype(jnp.int32)                 # [block_rows, 128]
        # Reduce only across vreg groups (pure VPU adds, no XLU):
        partial = onehot.reshape(block_rows // 8, 8, _LANES).sum(axis=0)  # [8,128]
        counts_ref[n] += partial

    if num_bins <= _MAX_UNROLL_BINS:
        for n in range(num_bins):
            accumulate(n)
    else:
        def body(n, carry):
            accumulate(n)
            return carry
        lax.fori_loop(0, num_bins, body, 0)

    @pl.when(pl.program_id(0) == pl.num_programs(0) - 1)
    def _finalize():
        # Cross-sublane and cross-lane reductions happen exactly once here.
        counts = jnp.sum(counts_ref[...], axis=1)             # [num_bins, 128]
        counts = jnp.sum(counts, axis=1, keepdims=True)       # [num_bins, 1]
        counts = counts.astype(jnp.float32)
        core = core_ref[...].astype(jnp.float32)              # [Nc, F]
        aux = aux_ref[...].astype(jnp.float32)                # [Na, F]
        avg = jnp.sum(counts[:num_core] * core, axis=0, keepdims=True)
        avg = avg + jnp.sum(counts[num_core:] * aux, axis=0, keepdims=True)
        out_ref[...] = (avg * inv_numel).astype(out_ref.dtype)


def id_avg_2d(core_feats, aux_feats, id_map, *, max_block_rows=2048):
    """JAX wrapper mirroring IdAvg2d.forward.

    core_feats : [num_core_feats, F] float
    aux_feats  : [num_aux_feats,  F] float
    id_map     : [num_rois, rH, rW]  integer indices into concat(core, aux)

    Returns avg_feat of shape [1, F] float32.
    """
    feat_size = core_feats.shape[1]
    num_bins = core_feats.shape[0] + aux_feats.shape[0]
    numel = int(id_map.size)  # static

    # Sublane-dense [rows, 128] layout.  Pad only the ragged tail of the last
    # 128-lane row (and up to 8 rows for tiny maps) with the -1 sentinel; the
    # grid itself is ragged, so no pad-to-block-multiple copy of the id_map.
    # TODO(synk): the (rare) pad copy when numel % 128 != 0 could be removed
    # entirely with memory_space=pl.ANY + a manual exact-range async copy.
    flat = id_map.reshape(-1)
    if not jnp.issubdtype(flat.dtype, jnp.integer):
        flat = flat.astype(jnp.int32)
    rows = max(_cdiv(numel, _LANES), 8)
    padded_len = rows * _LANES
    if padded_len != numel:
        flat = jnp.pad(flat, (0, padded_len - numel), constant_values=-1)
    ids2d = flat.reshape(rows, _LANES)

    block_rows = min(max_block_rows, (rows // 8) * 8)  # multiple of 8, <= rows
    num_blocks = _cdiv(rows, block_rows)
    ragged = (rows % block_rows) != 0

    kernel = functools.partial(
        _id_avg_kernel,
        inv_numel=1.0 / numel,
        rows=rows,
        ragged=ragged,
    )

    return pl.pallas_call(
        kernel,
        out_shape=jax.ShapeDtypeStruct((1, feat_size), jnp.float32),
        grid_spec=pltpu.PrefetchScalarGridSpec(
            num_scalar_prefetch=0,
            grid=(num_blocks,),
            in_specs=[
                pl.BlockSpec((block_rows, _LANES), lambda i: (i, 0)),
                pl.BlockSpec(core_feats.shape, lambda i: (0, 0)),
                pl.BlockSpec(aux_feats.shape, lambda i: (0, 0)),
            ],
            out_specs=pl.BlockSpec((1, feat_size), lambda i: (0, 0)),
            scratch_shapes=[pltpu.VMEM((num_bins, 8, _LANES), jnp.int32)],
        ),
        compiler_params=pltpu.CompilerParams(
            dimension_semantics=("arbitrary",),
        ),
    )(ids2d, core_feats, aux_feats)


def _reference(core_feats, aux_feats, id_map):
    """Pure-JAX reference matching the PyTorch forward exactly."""
    num_core = core_feats.shape[0]
    num_aux = aux_feats.shape[0]
    num_feats = num_core + num_aux
    flat = id_map.reshape(-1)
    counts = jnp.bincount(flat, minlength=num_feats, length=num_feats)
    counts = counts[:, None].astype(jnp.float32)
    avg = (counts[:num_core] * core_feats).sum(axis=0, keepdims=True)
    avg = avg + (counts[num_core:] * aux_feats).sum(axis=0, keepdims=True)
    avg = avg * (1.0 / flat.shape[0])
    return avg


if __name__ == "__main__":
    key = jax.random.PRNGKey(0)
    k1, k2, k3 = jax.random.split(key, 3)

    num_core_feats = 5
    num_aux_feats = 3
    feat_size = 32
    num_rois, rH, rW = 2, 8, 8  # id_map numel M = 128

    core_feats = jax.random.normal(k1, (num_core_feats, feat_size), jnp.float32)
    aux_feats = jax.random.normal(k2, (num_aux_feats, feat_size), jnp.float32)
    id_map = jax.random.randint(
        k3, (num_rois, rH, rW), 0, num_core_feats + num_aux_feats, jnp.int32
    )

    out = id_avg_2d(core_feats, aux_feats, id_map)
    out = jax.block_until_ready(out)

    ref = _reference(core_feats, aux_feats, id_map)
    assert out.shape == (1, feat_size), out.shape
    assert jnp.allclose(out, ref, atol=1e-5, rtol=1e-5), (out, ref)

    print("KERNEL_OK")
</pallas_src>

<mosaic_0001>
module attributes {stable_mosaic.version = 11 : i64} {
  func.func @_id_avg_kernel(%arg0: i32, %arg1: memref<8x128xi32, #tpu.memory_space<vmem>>, %arg2: memref<5x32xf32, #tpu.memory_space<vmem>>, %arg3: memref<3x32xf32, #tpu.memory_space<vmem>>, %arg4: memref<1x32xf32, #tpu.memory_space<vmem>>, %arg5: memref<8x8x128xi32, #tpu.memory_space<vmem>>) attributes {dimension_semantics = [#tpu.dimension_semantics<arbitrary>], iteration_bounds = array<i64: 1>, scalar_prefetch = 0 : i64, scratch_operands = 1 : i64, tpu.core_type = #tpu.core_type<tc>, window_params = [{transform_indices = @transform_0, window_bounds = array<i64: 8, 128>}, {pipeline_mode = #tpu.pipeline_mode<synchronous>, transform_indices = @transform_1, window_bounds = array<i64: 5, 32>}, {pipeline_mode = #tpu.pipeline_mode<synchronous>, transform_indices = @transform_2, window_bounds = array<i64: 3, 32>}, {pipeline_mode = #tpu.pipeline_mode<synchronous>, transform_indices = @transform_3, window_bounds = array<i64: 1, 32>}]} {
    %c0_i32 = arith.constant 0 : i32
    %0 = arith.cmpi eq, %arg0, %c0_i32 : i32
    %1 = arith.extui %0 : i1 to i32
    %c0_i32_0 = arith.constant 0 : i32
    %2 = arith.cmpi ne, %1, %c0_i32_0 : i32
    scf.if %2 {
      %c0_i32_53 = arith.constant 0 : i32
      %95 = vector.broadcast %c0_i32_53 : i32 to vector<8x8x128xi32>
      %c0_54 = arith.constant 0 : index
      %c0_55 = arith.constant 0 : index
      %c0_56 = arith.constant 0 : index
      %96 = vector.load %arg5[%c0_54, %c0_55, %c0_56] : memref<8x8x128xi32, #tpu.memory_space<vmem>>, vector<8x8x128xi32>
      tpu.vector_store %arg5[%c0_54, %c0_55, %c0_56], %95 {strides = array<i32>} : memref<8x8x128xi32, #tpu.memory_space<vmem>>, vector<8x8x128xi32>,
    } else {
    }
    %c0 = arith.constant 0 : index
    %c0_1 = arith.constant 0 : index
    %3 = vector.load %arg1[%c0, %c0_1] : memref<8x128xi32, #tpu.memory_space<vmem>>, vector<8x128xi32>
    %c0_i32_2 = arith.constant 0 : i32
    %4 = vector.broadcast %c0_i32_2 : i32 to vector<8x128xi32>
    %5 = arith.cmpi eq, %3, %4 : vector<8x128xi32>
    %6 = arith.extui %5 : vector<8x128xi1> to vector<8x128xi32>
    %7 = vector.shape_cast %6 : vector<8x128xi32> to vector<1x8x128xi32>
    %cst = arith.constant dense<0> : vector<8x128xi32>
    %8 = vector.multi_reduction <add>, %7, %cst [0] : vector<1x8x128xi32> to vector<8x128xi32>
    %c0_3 = arith.constant 0 : index
    %c0_4 = arith.constant 0 : index
    %c0_5 = arith.constant 0 : index
    %9 = vector.load %arg5[%c0_3, %c0_4, %c0_5] : memref<8x8x128xi32, #tpu.memory_space<vmem>>, vector<1x8x128xi32>
    %10 = vector.shape_cast %9 : vector<1x8x128xi32> to vector<8x128xi32>
    %11 = arith.addi %10, %8 : vector<8x128xi32>
    %c0_6 = arith.constant 0 : index
    %c0_7 = arith.constant 0 : index
    %c0_8 = arith.constant 0 : index
    %12 = vector.load %arg5[%c0_6, %c0_7, %c0_8] : memref<8x8x128xi32, #tpu.memory_space<vmem>>, vector<1x8x128xi32>
    %13 = vector.shape_cast %12 : vector<1x8x128xi32> to vector<8x128xi32>
    %14 = vector.shape_cast %11 : vector<8x128xi32> to vector<1x8x128xi32>
    tpu.vector_store %arg5[%c0_6, %c0_7, %c0_8], %14 {strides = array<i32>} : memref<8x8x128xi32, #tpu.memory_space<vmem>>, vector<1x8x128xi32>,
    %c1_i32 = arith.constant 1 : i32
    %15 = vector.broadcast %c1_i32 : i32 to vector<8x128xi32>
    %16 = arith.cmpi eq, %3, %15 : vector<8x128xi32>
    %17 = arith.extui %16 : vector<8x128xi1> to vector<8x128xi32>
    %18 = vector.shape_cast %17 : vector<8x128xi32> to vector<1x8x128xi32>
    %cst_9 = arith.constant dense<0> : vector<8x128xi32>
    %19 = vector.multi_reduction <add>, %18, %cst_9 [0] : vector<1x8x128xi32> to vector<8x128xi32>
    %c1 = arith.constant 1 : index
    %c0_10 = arith.constant 0 : index
    %c0_11 = arith.constant 0 : index
    %20 = vector.load %arg5[%c1, %c0_10, %c0_11] : memref<8x8x128xi32, #tpu.memory_space<vmem>>, vector<1x8x128xi32>
    %21 = vector.shape_cast %20 : vector<1x8x128xi32> to vector<8x128xi32>
    %22 = arith.addi %21, %19 : vector<8x128xi32>
    %c1_12 = arith.constant 1 : index
    %c0_13 = arith.constant 0 : index
    %c0_14 = arith.constant 0 : index
    %23 = vector.load %arg5[%c1_12, %c0_13, %c0_14] : memref<8x8x128xi32, #tpu.memory_space<vmem>>, vector<1x8x128xi32>
    %24 = vector.shape_cast %23 : vector<1x8x128xi32> to vector<8x128xi32>
    %25 = vector.shape_cast %22 : vector<8x128xi32> to vector<1x8x128xi32>
    tpu.vector_store %arg5[%c1_12, %c0_13, %c0_14], %25 {strides = array<i32>} : memref<8x8x128xi32, #tpu.memory_space<vmem>>, vector<1x8x128xi32>,
    %c2_i32 = arith.constant 2 : i32
    %26 = vector.broadcast %c2_i32 : i32 to vector<8x128xi32>
    %27 = arith.cmpi eq, %3, %26 : vector<8x128xi32>
    %28 = arith.extui %27 : vector<8x128xi1> to vector<8x128xi32>
    %29 = vector.shape_cast %28 : vector<8x128xi32> to vector<1x8x128xi32>
    %cst_15 = arith.constant dense<0> : vector<8x128xi32>
    %30 = vector.multi_reduction <add>, %29, %cst_15 [0] : vector<1x8x128xi32> to vector<8x128xi32>
    %c2 = arith.constant 2 : index
    %c0_16 = arith.constant 0 : index
    %c0_17 = arith.constant 0 : index
    %31 = vector.load %arg5[%c2, %c0_16, %c0_17] : memref<8x8x128xi32, #tpu.memory_space<vmem>>, vector<1x8x128xi32>
    %32 = vector.shape_cast %31 : vector<1x8x128xi32> to vector<8x128xi32>
    %33 = arith.addi %32, %30 : vector<8x128xi32>
    %c2_18 = arith.constant 2 : index
    %c0_19 = arith.constant 0 : index
    %c0_20 = arith.constant 0 : index
    %34 = vector.load %arg5[%c2_18, %c0_19, %c0_20] : memref<8x8x128xi32, #tpu.memory_space<vmem>>, vector<1x8x128xi32>
    %35 = vector.shape_cast %34 : vector<1x8x128xi32> to vector<8x128xi32>
    %36 = vector.shape_cast %33 : vector<8x128xi32> to vector<1x8x128xi32>
    tpu.vector_store %arg5[%c2_18, %c0_19, %c0_20], %36 {strides = array<i32>} : memref<8x8x128xi32, #tpu.memory_space<vmem>>, vector<1x8x128xi32>,
    %c3_i32 = arith.constant 3 : i32
    %37 = vector.broadcast %c3_i32 : i32 to vector<8x128xi32>
    %38 = arith.cmpi eq, %3, %37 : vector<8x128xi32>
    %39 = arith.extui %38 : vector<8x128xi1> to vector<8x128xi32>
    %40 = vector.shape_cast %39 : vector<8x128xi32> to vector<1x8x128xi32>
    %cst_21 = arith.constant dense<0> : vector<8x128xi32>
    %41 = vector.multi_reduction <add>, %40, %cst_21 [0] : vector<1x8x128xi32> to vector<8x128xi32>
    %c3 = arith.constant 3 : index
    %c0_22 = arith.constant 0 : index
    %c0_23 = arith.constant 0 : index
    %42 = vector.load %arg5[%c3, %c0_22, %c0_23] : memref<8x8x128xi32, #tpu.memory_space<vmem>>, vector<1x8x128xi32>
    %43 = vector.shape_cast %42 : vector<1x8x128xi32> to vector<8x128xi32>
    %44 = arith.addi %43, %41 : vector<8x128xi32>
    %c3_24 = arith.constant 3 : index
    %c0_25 = arith.constant 0 : index
    %c0_26 = arith.constant 0 : index
    %45 = vector.load %arg5[%c3_24, %c0_25, %c0_26] : memref<8x8x128xi32, #tpu.memory_space<vmem>>, vector<1x8x128xi32>
    %46 = vector.shape_cast %45 : vector<1x8x128xi32> to vector<8x128xi32>
    %47 = vector.shape_cast %44 : vector<8x128xi32> to vector<1x8x128xi32>
    tpu.vector_store %arg5[%c3_24, %c0_25, %c0_26], %47 {strides = array<i32>} : memref<8x8x128xi32, #tpu.memory_space<vmem>>, vector<1x8x128xi32>,
    %c4_i32 = arith.constant 4 : i32
    %48 = vector.broadcast %c4_i32 : i32 to vector<8x128xi32>
    %49 = arith.cmpi eq, %3, %48 : vector<8x128xi32>
    %50 = arith.extui %49 : vector<8x128xi1> to vector<8x128xi32>
    %51 = vector.shape_cast %50 : vector<8x128xi32> to vector<1x8x128xi32>
    %cst_27 = arith.constant dense<0> : vector<8x128xi32>
    %52 = vector.multi_reduction <add>, %51, %cst_27 [0] : vector<1x8x128xi32> to vector<8x128xi32>
    %c4 = arith.constant 4 : index
    %c0_28 = arith.constant 0 : index
    %c0_29 = arith.constant 0 : index
    %53 = vector.load %arg5[%c4, %c0_28, %c0_29] : memref<8x8x128xi32, #tpu.memory_space<vmem>>, vector<1x8x128xi32>
    %54 = vector.shape_cast %53 : vector<1x8x128xi32> to vector<8x128xi32>
    %55 = arith.addi %54, %52 : vector<8x128xi32>
    %c4_30 = arith.constant 4 : index
    %c0_31 = arith.constant 0 : index
    %c0_32 = arith.constant 0 : index
    %56 = vector.load %arg5[%c4_30, %c0_31, %c0_32] : memref<8x8x128xi32, #tpu.memory_space<vmem>>, vector<1x8x128xi32>
    %57 = vector.shape_cast %56 : vector<1x8x128xi32> to vector<8x128xi32>
    %58 = vector.shape_cast %55 : vector<8x128xi32> to vector<1x8x128xi32>
    tpu.vector_store %arg5[%c4_30, %c0_31, %c0_32], %58 {strides = array<i32>} : memref<8x8x128xi32, #tpu.memory_space<vmem>>, vector<1x8x128xi32>,
    %c5_i32 = arith.constant 5 : i32
    %59 = vector.broadcast %c5_i32 : i32 to vector<8x128xi32>
    %60 = arith.cmpi eq, %3, %59 : vector<8x128xi32>
    %61 = arith.extui %60 : vector<8x128xi1> to vector<8x128xi32>
    %62 = vector.shape_cast %61 : vector<8x128xi32> to vector<1x8x128xi32>
    %cst_33 = arith.constant dense<0> : vector<8x128xi32>
    %63 = vector.multi_reduction <add>, %62, %cst_33 [0] : vector<1x8x128xi32> to vector<8x128xi32>
    %c5 = arith.constant 5 : index
    %c0_34 = arith.constant 0 : index
    %c0_35 = arith.constant 0 : index
    %64 = vector.load %arg5[%c5, %c0_34, %c0_35] : memref<8x8x128xi32, #tpu.memory_space<vmem>>, vector<1x8x128xi32>
    %65 = vector.shape_cast %64 : vector<1x8x128xi32> to vector<8x128xi32>
    %66 = arith.addi %65, %63 : vector<8x128xi32>
    %c5_36 = arith.constant 5 : index
    %c0_37 = arith.constant 0 : index
    %c0_38 = arith.constant 0 : index
    %67 = vector.load %arg5[%c5_36, %c0_37, %c0_38] : memref<8x8x128xi32, #tpu.memory_space<vmem>>, vector<1x8x128xi32>
    %68 = vector.shape_cast %67 : vector<1x8x128xi32> to vector<8x128xi32>
    %69 = vector.shape_cast %66 : vector<8x128xi32> to vector<1x8x128xi32>
    tpu.vector_store %arg5[%c5_36, %c0_37, %c0_38], %69 {strides = array<i32>} : memref<8x8x128xi32, #tpu.memory_space<vmem>>, vector<1x8x128xi32>,
    %c6_i32 = arith.constant 6 : i32
    %70 = vector.broadcast %c6_i32 : i32 to vector<8x128xi32>
    %71 = arith.cmpi eq, %3, %70 : vector<8x128xi32>
    %72 = arith.extui %71 : vector<8x128xi1> to vector<8x128xi32>
    %73 = vector.shape_cast %72 : vector<8x128xi32> to vector<1x8x128xi32>
    %cst_39 = arith.constant dense<0> : vector<8x128xi32>
    %74 = vector.multi_reduction <add>, %73, %cst_39 [0] : vector<1x8x128xi32> to vector<8x128xi32>
    %c6 = arith.constant 6 : index
    %c0_40 = arith.constant 0 : index
    %c0_41 = arith.constant 0 : index
    %75 = vector.load %arg5[%c6, %c0_40, %c0_41] : memref<8x8x128xi32, #tpu.memory_space<vmem>>, vector<1x8x128xi32>
    %76 = vector.shape_cast %75 : vector<1x8x128xi32> to vector<8x128xi32>
    %77 = arith.addi %76, %74 : vector<8x128xi32>
    %c6_42 = arith.constant 6 : index
    %c0_43 = arith.constant 0 : index
    %c0_44 = arith.constant 0 : index
    %78 = vector.load %arg5[%c6_42, %c0_43, %c0_44] : memref<8x8x128xi32, #tpu.memory_space<vmem>>, vector<1x8x128xi32>
    %79 = vector.shape_cast %78 : vector<1x8x128xi32> to vector<8x128xi32>
    %80 = vector.shape_cast %77 : vector<8x128xi32> to vector<1x8x128xi32>
    tpu.vector_store %arg5[%c6_42, %c0_43, %c0_44], %80 {strides = array<i32>} : memref<8x8x128xi32, #tpu.memory_space<vmem>>, vector<1x8x128xi32>,
    %c7_i32 = arith.constant 7 : i32
    %81 = vector.broadcast %c7_i32 : i32 to vector<8x128xi32>
    %82 = arith.cmpi eq, %3, %81 : vector<8x128xi32>
    %83 = arith.extui %82 : vector<8x128xi1> to vector<8x128xi32>
    %84 = vector.shape_cast %83 : vector<8x128xi32> to vector<1x8x128xi32>
    %cst_45 = arith.constant dense<0> : vector<8x128xi32>
    %85 = vector.multi_reduction <add>, %84, %cst_45 [0] : vector<1x8x128xi32> to vector<8x128xi32>
    %c7 = arith.constant 7 : index
    %c0_46 = arith.constant 0 : index
    %c0_47 = arith.constant 0 : index
    %86 = vector.load %arg5[%c7, %c0_46, %c0_47] : memref<8x8x128xi32, #tpu.memory_space<vmem>>, vector<1x8x128xi32>
    %87 = vector.shape_cast %86 : vector<1x8x128xi32> to vector<8x128xi32>
    %88 = arith.addi %87, %85 : vector<8x128xi32>
    %c7_48 = arith.constant 7 : index
    %c0_49 = arith.constant 0 : index
    %c0_50 = arith.constant 0 : index
    %89 = vector.load %arg5[%c7_48, %c0_49, %c0_50] : memref<8x8x128xi32, #tpu.memory_space<vmem>>, vector<1x8x128xi32>
    %90 = vector.shape_cast %89 : vector<1x8x128xi32> to vector<8x128xi32>
    %91 = vector.shape_cast %88 : vector<8x128xi32> to vector<1x8x128xi32>
    tpu.vector_store %arg5[%c7_48, %c0_49, %c0_50], %91 {strides = array<i32>} : memref<8x8x128xi32, #tpu.memory_space<vmem>>, vector<1x8x128xi32>,
    %c0_i32_51 = arith.constant 0 : i32
    %92 = arith.cmpi eq, %arg0, %c0_i32_51 : i32
    %93 = arith.extui %92 : i1 to i32
    %c0_i32_52 = arith.constant 0 : i32
    %94 = arith.cmpi ne, %93, %c0_i32_52 : i32
    scf.if %94 {
      %c0_53 = arith.constant 0 : index
      %c0_54 = arith.constant 0 : index
      %c0_55 = arith.constant 0 : index
      %95 = vector.load %arg5[%c0_53, %c0_54, %c0_55] : memref<8x8x128xi32, #tpu.memory_space<vmem>>, vector<8x8x128xi32>
      %cst_56 = arith.constant dense<0> : vector<8x128xi32>
      %96 = vector.multi_reduction <add>, %95, %cst_56 [1] : vector<8x8x128xi32> to vector<8x128xi32>
      %cst_57 = arith.constant dense<0> : vector<8xi32>
      %97 = vector.multi_reduction <add>, %96, %cst_57 [1] : vector<8x128xi32> to vector<8xi32>
      %98 = vector.shape_cast %97 : vector<8xi32> to vector<8x1xi32>
      %99 = arith.sitofp %98 : vector<8x1xi32> to vector<8x1xf32>
      %c0_58 = arith.constant 0 : index
      %c0_59 = arith.constant 0 : index
      %100 = vector.load %arg2[%c0_58, %c0_59] : memref<5x32xf32, #tpu.memory_space<vmem>>, vector<5x32xf32>
      %c0_60 = arith.constant 0 : index
      %c0_61 = arith.constant 0 : index
      %101 = vector.load %arg3[%c0_60, %c0_61] : memref<3x32xf32, #tpu.memory_space<vmem>>, vector<3x32xf32>
      %102 = vector.extract_strided_slice %99 {offsets = [0, 0], sizes = [5, 1], strides = [1, 1]} : vector<8x1xf32> to vector<5x1xf32>
      %103 = vector.broadcast %102 : vector<5x1xf32> to vector<5x32xf32>
      %104 = arith.mulf %103, %100 : vector<5x32xf32>
      %cst_62 = arith.constant dense<0.000000e+00> : vector<32xf32>
      %105 = vector.multi_reduction <add>, %104, %cst_62 [0] : vector<5x32xf32> to vector<32xf32>
      %106 = vector.shape_cast %105 : vector<32xf32> to vector<1x32xf32>
      %107 = vector.extract_strided_slice %99 {offsets = [5, 0], sizes = [3, 1], strides = [1, 1]} : vector<8x1xf32> to vector<3x1xf32>
      %108 = vector.broadcast %107 : vector<3x1xf32> to vector<3x32xf32>
      %109 = arith.mulf %108, %101 : vector<3x32xf32>
      %cst_63 = arith.constant dense<0.000000e+00> : vector<32xf32>
      %110 = vector.multi_reduction <add>, %109, %cst_63 [0] : vector<3x32xf32> to vector<32xf32>
      %111 = vector.shape_cast %110 : vector<32xf32> to vector<1x32xf32>
      %112 = arith.addf %106, %111 : vector<1x32xf32>
      %cst_64 = arith.constant 7.812500e-03 : f32
      %113 = vector.broadcast %cst_64 : f32 to vector<1x32xf32>
      %114 = arith.mulf %112, %113 : vector<1x32xf32>
      %c0_65 = arith.constant 0 : index
      %c0_66 = arith.constant 0 : index
      %115 = vector.load %arg4[%c0_65, %c0_66] : memref<1x32xf32, #tpu.memory_space<vmem>>, vector<1x32xf32>
      tpu.vector_store %arg4[%c0_65, %c0_66], %114 {strides = array<i32>} : memref<1x32xf32, #tpu.memory_space<vmem>>, vector<1x32xf32>,
    } else {
    }
    return
  }
  func.func @transform_0(%arg0: i32) -> (i32, i32) {
    %c0_i32 = arith.constant 0 : i32
    %c0_i32_0 = arith.constant 0 : i32
    return %arg0, %c0_i32 : i32, i32
  }
  func.func @transform_1(%arg0: i32) -> (i32, i32) {
    %c0_i32 = arith.constant 0 : i32
    %c0_i32_0 = arith.constant 0 : i32
    %c0_i32_1 = arith.constant 0 : i32
    return %c0_i32, %c0_i32_0 : i32, i32
  }
  func.func @transform_2(%arg0: i32) -> (i32, i32) {
    %c0_i32 = arith.constant 0 : i32
    %c0_i32_0 = arith.constant 0 : i32
    %c0_i32_1 = arith.constant 0 : i32
    return %c0_i32, %c0_i32_0 : i32, i32
  }
  func.func @transform_3(%arg0: i32) -> (i32, i32) {
    %c0_i32 = arith.constant 0 : i32
    %c0_i32_0 = arith.constant 0 : i32
    %c0_i32_1 = arith.constant 0 : i32
    return %c0_i32, %c0_i32_0 : i32, i32
  }
}

</mosaic_0001>

<bundles_post_ra>
// kernel: tpu_custom_call.1
= control target key start
LH: loop header
LB: loop body
LE: loop exit
PB: predicated region body
PF: predicated region fallthrough
CT: control target
= control target key end

     0   :  { %8 = vsyncpa [#allocation4], 0  ;;  %s396_s0 = inlined_call_operand.hbm [shape: s32[8,128], index: 0, kind: input, shape index: {}]   ;;  %s397_s1 = inlined_call_operand.hbm [shape: f32[5,32], index: 1, kind: input, shape index: {}]   ;;  %s398_s2 = inlined_call_operand.hbm [shape: f32[3,32], index: 2, kind: input, shape index: {}]   ;;  %s399_s3 = inlined_call_operand.hbm [shape: f32[1,32], index: 3, kind: output, shape index: {}]  }
   0x1   :  { %9 = vsyncpa [#allocation7], 0  ;;  %s27_s14 = sshll.u32 %s397_s1, 4  ;;  %s28_s14 = int_to_ptr.hbm [resolvable:$true] %s27_s14 }
   0x2   :  { %10 = vsyncpa [#allocation5], 0  ;;  %s357_s15 = smov [#allocation6]   ;;  %s16_s19 = sshll.u32 %s396_s0, 4  ;;  %s17_s19 = int_to_ptr.hbm [resolvable:$true] %s16_s19 }
   0x3   :  { %s29_s16 = sshll.u32 %s357_s15, 4  ;;  %s358_s20 = smov [#allocation3]   ;;  %s30_s16 = int_to_ptr.vmem [resolvable:$true] %s29_s16 }
   0x4   :  { %32 = dma.hbm_to_vmem [thread:$0]  %s28_s14, 128, %s30_s16, [#allocation7]  }
   0x5   :  { %s18_s21 = sshll.u32 %s358_s20, 4  ;;  %s38_s24 = sshll.u32 %s398_s2, 4  ;;  %s19_s21 = int_to_ptr.vmem [resolvable:$true] %s18_s21  ;;  %s39_s24 = int_to_ptr.hbm [resolvable:$true] %s38_s24 }
   0x6   :  { %21 = dma.hbm_to_vmem [thread:$0]  %s17_s19, 128, %s19_s21, [#allocation4]  }
   0x7   :  { %s359_s1 = smov [#allocation8]  }
   0x8   :  { %s40_s25 = sshll.u32 %s359_s1, 4  ;;  %s41_s25 = int_to_ptr.vmem [resolvable:$true] %s40_s25 }
   0x9   :  { %43 = dma.hbm_to_vmem [thread:$0]  %s39_s24, 64, %s41_s25, [#allocation7]  }
   0xa   :  { %351 = dma.done.wait [#allocation4], 128  }
   0xb   :  { %352 = vsyncadd [#allocation4], 4294967168 }
   0xc   :  { %353 = dma.done.wait [#allocation7], 192  }
   0xd   :  { %354 = vsyncadd [#allocation7], 4294967104  ;;  %v68_v0 = vld [vmem:[#allocation3] sm:$0xff]  ;;  %v360_v1 = vmov 0   ;;  %vm175_vm8 = vcmask 1041409   ;;  %vm177_vm9 = vcmask 1042434  }
   0xe   :  { %vm69_vm0 = vcmp.eq.s32.totalorder %v68_v0, 0  ;;  %vm74_vm1 = vcmp.eq.s32.totalorder %v68_v0, 1  ;;  %vm80_vm2 = vcmp.eq.s32.totalorder %v68_v0, 2  ;;  %vm86_vm3 = vcmp.eq.s32.totalorder %v68_v0, 3  ;;  %s361_s0 = smov [#allocation9]   ;;  %s239_s28 = sshll.u32 %s399_s3, 4  ;;  %s240_s28 = int_to_ptr.hbm [resolvable:$true] %s239_s28 }
   0xf   :  { %v70_v2 = vsel %vm69_vm0, 1, %v360_v1  ;;  %v75_v3 = vsel %vm74_vm1, 1, %v360_v1  ;;  %v81_v4 = vsel %vm80_vm2, 1, %v360_v1  ;;  %v87_v5 = vsel %vm86_vm3, 1, %v360_v1  ;;  %s237_s2 = sshll.u32 %s361_s0, 4  ;;  %s238_s2 = int_to_ptr.vmem [resolvable:$true] %s237_s2 }
  0x10   :  { %vm92_vm4 = vcmp.eq.s32.totalorder %v68_v0, 4  ;;  %vm98_vm5 = vcmp.eq.s32.totalorder %v68_v0, 5  ;;  %vm104_vm6 = vcmp.eq.s32.totalorder %v68_v0, 6  ;;  %vm110_vm7 = vcmp.eq.s32.totalorder %v68_v0, 7 }
  0x11   :  { %v93_v6 = vsel %vm92_vm4, 1, %v360_v1  ;;  %v99_v7 = vsel %vm98_vm5, 1, %v360_v1  ;;  %v105_v8 = vsel %vm104_vm6, 1, %v360_v1  ;;  %v111_v9 = vsel %vm110_vm7, 1, %v360_v1 }
  0x12   :  { %v127_v10 = vrot.slane %v70_v2, 4  ;;  %v133_v11 = vrot.slane %v75_v3, 4  ;;  %v139_v12 = vrot.slane %v81_v4, 4  ;;  %v145_v13 = vrot.slane %v87_v5, 4 }
  0x13   :  { %v151_v14 = vrot.slane %v93_v6, 4  ;;  %v157_v15 = vrot.slane %v99_v7, 4  ;;  %v163_v16 = vrot.slane %v105_v8, 4  ;;  %v169_v17 = vrot.slane %v111_v9, 4 }
  0x14   :  { %v128_v18 = vadd.s32 %v127_v10, %v70_v2  ;;  %v134_v19 = vadd.s32 %v133_v11, %v75_v3  ;;  %v140_v20 = vadd.s32 %v139_v12, %v81_v4  ;;  %v146_v21 = vadd.s32 %v145_v13, %v87_v5  ;;  %v202_v13 = vld [vmem:[#allocation6] sm:$0x1f] }
  0x15   :  { %v152_v22 = vadd.s32 %v151_v14, %v93_v6  ;;  %v158_v23 = vadd.s32 %v157_v15, %v99_v7  ;;  %v164_v24 = vadd.s32 %v163_v16, %v105_v8  ;;  %v170_v25 = vadd.s32 %v169_v17, %v111_v9  ;;  %v203_v7 = vld [vmem:[#allocation8] sm:$0x7] }
  0x16   :  { %v129_v26 = vrot.slane %v128_v18, 2  ;;  %v135_v27 = vrot.slane %v134_v19, 2  ;;  %v141_v28 = vrot.slane %v140_v20, 2  ;;  %v147_v29 = vrot.slane %v146_v21, 2 }
  0x17   :  { %v153_v30 = vrot.slane %v152_v22, 2  ;;  %v159_v31 = vrot.slane %v158_v23, 2  ;;  %v165_v32 = vrot.slane %v164_v24, 2  ;;  %v171_v33 = vrot.slane %v170_v25, 2 }
  0x18   :  { %v130_v34 = vadd.s32 %v129_v26, %v128_v18  ;;  %v136_v35 = vadd.s32 %v135_v27, %v134_v19  ;;  %v142_v36 = vadd.s32 %v141_v28, %v140_v20  ;;  %v148_v37 = vadd.s32 %v147_v29, %v146_v21 }
  0x19   :  { %v154_v38 = vadd.s32 %v153_v30, %v152_v22  ;;  %v160_v39 = vadd.s32 %v159_v31, %v158_v23  ;;  %v166_v40 = vadd.s32 %v165_v32, %v164_v24  ;;  %v172_v41 = vadd.s32 %v171_v33, %v170_v25 }
  0x1a   :  { %v131_v42 = vrot.slane %v130_v34, 1  ;;  %v137_v43 = vrot.slane %v136_v35, 1  ;;  %v143_v44 = vrot.slane %v142_v36, 1  ;;  %v149_v45 = vrot.slane %v148_v37, 1 }
  0x1b   :  { %v155_v46 = vrot.slane %v154_v38, 1  ;;  %v161_v47 = vrot.slane %v160_v39, 1  ;;  %v167_v48 = vrot.slane %v166_v40, 1  ;;  %v173_v49 = vrot.slane %v172_v41, 1 }
  0x1c   :  { %v132_v50 = vadd.s32 %v131_v42, %v130_v34  ;;  %v138_v51 = vadd.s32 %v137_v43, %v136_v35  ;;  %v144_v52 = vadd.s32 %v143_v44, %v142_v36  ;;  %v150_v53 = vadd.s32 %v149_v45, %v148_v37 }
  0x1d   :  { %v156_v54 = vadd.s32 %v155_v46, %v154_v38  ;;  %vm179_vm10 = vcmask 1043459   ;;  %v162_v55 = vadd.s32 %v161_v47, %v160_v39  ;;  %vm181_vm11 = vcmask 1044484  }
  0x1e   :  { %v176_v56 = vsel %vm175_vm8, %v138_v51, %v132_v50  ;;  %v168_v57 = vadd.s32 %v167_v48, %v166_v40  ;;  %vm183_vm12 = vcmask 1045509   ;;  %v174_v59 = vadd.s32 %v173_v49, %v172_v41 }
  0x1f   :  { %v178_v58 = vsel %vm177_vm9, %v144_v52, %v176_v56  ;;  %vm185_vm13 = vcmask 1046534   ;;  %vm187_vm14 = vcmask 1047559   ;;  %v214_v11 = vrot.slane %v203_v7, 3 }
  0x20   :  { %v180_v60 = vsel %vm179_vm10, %v150_v53, %v178_v58  ;;  %vm205_vm15 = vcmask 258048   ;;  %vm220_vm0 = vcmask 256000   ;;  %vm230_vm1 = vcmask 253952  }
  0x21   :  { %v182_v61 = vsel %vm181_vm11, %v156_v54, %v180_v60 }
  0x22   :  { %v184_v62 = vsel %vm183_vm12, %v162_v55, %v182_v61 }
  0x23   :  { %v186_v63 = vsel %vm185_vm13, %v168_v57, %v184_v62 }
  0x24   :  { %v188_v0 = vsel %vm187_vm14, %v174_v59, %v186_v63 }
  0x25   :  { %v190_v1 = vshrl.u32 %v188_v0, 16  ;;  %v189_v3 = vand.u32 65535, %v188_v0 }
  0x27   :  { %v192_v2 = vcvt.s32.f32 %v190_v1  ;;  %v191_v4 = vcvt.s32.f32 %v189_v3 }
  0x29   :  { %195 = vadd.xlane.f32.xlu0 %v192_v2 }
  0x31   :  { %193 = vadd.xlane.f32.xlu0 %v191_v4 }
  0x9c   :  { %v196_v5 = vpop.xlane.xlu0 %195 }
  0x9d   :  { %v198_v6 = vcvt.f32.s32 %v196_v5 }
  0x9f   :  { %v199_v9 = vshll.u32 %v198_v6, 16 }
  0xa4   :  { %v194_v8 = vpop.xlane.xlu0 %193 }
  0xa5   :  { %v197_v10 = vcvt.f32.s32 %v194_v8 }
  0xa7   :  { %v200_v12 = vadd.s32 %v199_v9, %v197_v10 }
  0xa9   :  { %v201_v14 = vcvt.s32.f32 %v200_v12 }
  0xab   :  { %v204_v15 = vmul.f32 %v202_v13, %v201_v14  ;;  %v216_v16 = vmul.f32 %v214_v11, %v201_v14 }
  0xad   :  { %v206_v17 = vsel %vm205_vm15, %v204_v15, 0.0  ;;  %v218_v18 = vrot.slane %v216_v16, 5 }
  0xae   :  { %v207_v19 = vrot.slane %v206_v17, 4 }
  0xaf   :  { %v221_v20 = vsel %vm220_vm0, %v218_v18, 0.0 }
  0xb0   :  { %v208_v21 = vadd.f32 %v207_v19, %v206_v17  ;;  %v222_v22 = vrot.slane %v221_v20, 4 }
  0xb2   :  { %v209_v23 = vrot.slane %v208_v21, 2  ;;  %v223_v24 = vadd.f32 %v222_v22, %v221_v20 }
  0xb4   :  { %v210_v25 = vadd.f32 %v209_v23, %v208_v21  ;;  %v224_v26 = vrot.slane %v223_v24, 2 }
  0xb6   :  { %v211_v27 = vrot.slane %v210_v25, 1  ;;  %v225_v28 = vadd.f32 %v224_v26, %v223_v24 }
  0xb8   :  { %v226_v29 = vrot.slane %v225_v28, 1  ;;  %v212_v30 = vadd.f32 %v211_v27, %v210_v25 }
  0xba   :  { %v227_v31 = vadd.f32 %v226_v29, %v225_v28 }
  0xbc   :  { %v228_v32 = vadd.f32 %v227_v31, %v212_v30 }
  0xbe   :  { %v229_v33 = vmul.f32 0.0078125, %v228_v32 }
  0xc0   :  { %231 = vst.msk [vmem:[#allocation9] sm:$0x1] %vm230_vm1, %v229_v33 }
  0xc1   :  { %242 = dma.vmem_to_hbm [thread:$0]  %s238_s2, 16, %s240_s28, [#allocation5]  }
  0xc2   :  { %355 = dma.done.wait [#allocation5], 16  }
  0xc3   :  { %356 = vsyncadd [#allocation5], 4294967280 }
  0xc4   :  { %247 = vsyncpa [#allocation4], 1 }
  0xc5   :  { %248 = vsyncpa [#allocation7], 1 }
  0xc6   :  { %249 = vsyncpa [#allocation5], 1 }

</bundles_post_ra>
